<compile_context>
chip_gen: v6e
topology: v6e:2x2x1
jax: 0.10.0
libtpu: 0.0.40
codegen_flags: <defaults>
</compile_context>

<pallas_src>
import jax
import jax.numpy as jnp
from jax.experimental import pallas as pl
from jax.experimental.pallas import tpu as pltpu


def _pos_emb_kernel(wt_ref, b_ref, o_ref):
    # wt_ref: (tS, tD) tile of W.T restricted to rows [0, S)
    # b_ref : (1, tD)  bias tile
    # o_ref : (1, tS, tD) output tile for one batch element
    o_ref[...] = (wt_ref[...] + b_ref[...])[None]


def _pick_tile(dim, pref, align):
    """Largest multiple of `align` <= `pref` that divides `dim`, else full dim."""
    if dim <= pref:
        return dim
    t = (pref // align) * align
    while t >= align:
        if dim % t == 0:
            return t
        t -= align
    return dim  # fall back to a single full-extent block


def learned_positional_embedding(x, weight, bias, max_length):
    """weight: (model_dim, max_length), bias: (model_dim,) -- nn.Linear params."""
    B, S = int(x.shape[0]), int(x.shape[1])
    model_dim = int(weight.shape[0])
    assert S <= max_length, "sequence length exceeds max_length"

    # Only rows [0, S) of W.T are ever used: slice before transposing so the
    # wrapper-side XLA transpose never touches the unused columns either.
    wt = weight[:, :S].T.astype(jnp.float32)            # (S, model_dim)
    b2 = bias.reshape(1, model_dim).astype(jnp.float32)  # (1, model_dim)

    tS = _pick_tile(S, 512, 8)           # sublane-aligned or full S
    tD = _pick_tile(model_dim, 1024, 128)  # lane-dense or full D

    grid = (S // tS, model_dim // tD, B)  # B innermost: weight tile stays resident

    return pl.pallas_call(
        _pos_emb_kernel,
        out_shape=jax.ShapeDtypeStruct((B, S, model_dim), jnp.float32),
        grid_spec=pltpu.PrefetchScalarGridSpec(
            num_scalar_prefetch=0,
            grid=grid,
            in_specs=[
                pl.BlockSpec((tS, tD), lambda s, d, b: (s, d)),
                pl.BlockSpec((1, tD), lambda s, d, b: (0, d)),
            ],
            out_specs=pl.BlockSpec((1, tS, tD), lambda s, d, b: (b, s, d)),
        ),
        compiler_params=pltpu.CompilerParams(
            dimension_semantics=("parallel", "parallel", "parallel")),
    )(wt, b2)


if __name__ == "__main__":
    # Small shapes consistent with the module.
    B, S = 2, 8
    max_length, model_dim = 16, 32

    key = jax.random.PRNGKey(0)
    k_w, k_b, k_x = jax.random.split(key, 3)

    # Deterministic nn.Linear(max_length, model_dim)-style params:
    # weight (model_dim, max_length), bias (model_dim,), U(-1/sqrt(in), 1/sqrt(in)).
    bound = 1.0 / (max_length ** 0.5)
    weight = jax.random.uniform(k_w, (model_dim, max_length), jnp.float32,
                                minval=-bound, maxval=bound)
    bias = jax.random.uniform(k_b, (model_dim,), jnp.float32,
                              minval=-bound, maxval=bound)

    # x: (B, S) token ids -- only its shape is used by the forward pass.
    x = jax.random.randint(k_x, (B, S), 0, max_length, dtype=jnp.int32)

    out = learned_positional_embedding(x, weight, bias, max_length)
    out = jax.block_until_ready(out)

    # Reference (plain JAX) check of exact module semantics.
    pos = jnp.broadcast_to(jnp.arange(S), (B, S))
    onehot = jax.nn.one_hot(pos, max_length, dtype=jnp.float32)
    ref = onehot @ weight.T + bias
    assert out.shape == (B, S, model_dim)
    assert out.dtype == jnp.float32
    assert jnp.allclose(out, ref, atol=1e-5, rtol=1e-5)

    print("KERNEL_OK")
</pallas_src>

<mosaic_0001>
module attributes {stable_mosaic.version = 11 : i64} {
  func.func @_pos_emb_kernel(%arg0: i32, %arg1: i32, %arg2: i32, %arg3: memref<8x32xf32, #tpu.memory_space<vmem>>, %arg4: memref<1x32xf32, #tpu.memory_space<vmem>>, %arg5: memref<1x8x32xf32, #tpu.memory_space<vmem>>) attributes {dimension_semantics = [#tpu.dimension_semantics<parallel>, #tpu.dimension_semantics<parallel>, #tpu.dimension_semantics<parallel>], iteration_bounds = array<i64: 1, 1, 2>, scalar_prefetch = 0 : i64, scratch_operands = 0 : i64, tpu.core_type = #tpu.core_type<tc>, window_params = [{transform_indices = @transform_0, window_bounds = array<i64: 8, 32>}, {transform_indices = @transform_1, window_bounds = array<i64: 1, 32>}, {transform_indices = @transform_2, window_bounds = array<i64: 1, 8, 32>}]} {
    %c0 = arith.constant 0 : index
    %c0_0 = arith.constant 0 : index
    %0 = vector.load %arg3[%c0, %c0_0] : memref<8x32xf32, #tpu.memory_space<vmem>>, vector<8x32xf32>
    %c0_1 = arith.constant 0 : index
    %c0_2 = arith.constant 0 : index
    %1 = vector.load %arg4[%c0_1, %c0_2] : memref<1x32xf32, #tpu.memory_space<vmem>>, vector<1x32xf32>
    %2 = vector.broadcast %1 : vector<1x32xf32> to vector<8x32xf32>
    %3 = arith.addf %0, %2 : vector<8x32xf32>
    %4 = vector.shape_cast %3 : vector<8x32xf32> to vector<1x8x32xf32>
    %c0_3 = arith.constant 0 : index
    %c0_4 = arith.constant 0 : index
    %c0_5 = arith.constant 0 : index
    %5 = vector.load %arg5[%c0_3, %c0_4, %c0_5] : memref<1x8x32xf32, #tpu.memory_space<vmem>>, vector<1x8x32xf32>
    tpu.vector_store %arg5[%c0_3, %c0_4, %c0_5], %4 {strides = array<i32>} : memref<1x8x32xf32, #tpu.memory_space<vmem>>, vector<1x8x32xf32>,
    return
  }
  func.func @transform_0(%arg0: i32, %arg1: i32, %arg2: i32) -> (i32, i32) {
    %c0_i32 = arith.constant 0 : i32
    return %arg0, %arg1 : i32, i32
  }
  func.func @transform_1(%arg0: i32, %arg1: i32, %arg2: i32) -> (i32, i32) {
    %c0_i32 = arith.constant 0 : i32
    %c0_i32_0 = arith.constant 0 : i32
    return %c0_i32, %arg1 : i32, i32
  }
  func.func @transform_2(%arg0: i32, %arg1: i32, %arg2: i32) -> (i32, i32, i32) {
    %c0_i32 = arith.constant 0 : i32
    return %arg2, %arg0, %arg1 : i32, i32, i32
  }
}

</mosaic_0001>

<bundles_post_ra>
// kernel: tpu_custom_call.1
= control target key start
LH: loop header
LB: loop body
LE: loop exit
PB: predicated region body
PF: predicated region fallthrough
CT: control target
= control target key end

     0   :  { %7 = vsyncpa [#allocation3], 0  ;;  %s618_s0 = inlined_call_operand.hbm [shape: f32[8,32], index: 0, kind: input, shape index: {}]   ;;  %s619_s1 = inlined_call_operand.vmem [shape: f32[1,32], index: 1, kind: input, shape index: {}]   ;;  %s620_s2 = inlined_call_operand.hbm [shape: f32[2,8,32], index: 2, kind: output, shape index: {}]  }
   0x1   :  { %8 = vsyncpa [#allocation4], 0 }
   0x2   :  { %10 = vsyncpa [#allocation4 + $0x1], 0  ;;  %s500_s9 = smov 0   ;;  %s502_s10 = smov 0  }
   0x3   :  { %s504_s11 = smov 0   ;;  %s506_s12 = smov 0  }
   0x4   :  { %s508_s13 = smov 0   ;;  %s510_s14 = smov 0  }
   0x5 LB: > { %s296_s15 = sadd.s32 4294967295, %s481_s14   ;;  %s297_s16 = sadd.s32 4294967294, %s481_s14   ;;  %s481_s14 = sphi %s510_s14, %s16_s14   ;;  %s477_s13 = sphi %s508_s13, %s629_s13   ;;  %s473_s12 = sphi %s506_s12, %s628_s12   ;;  %s469_s11 = sphi %s504_s11, %s627_s11   ;;  %s465_s10 = sphi %s502_s10, %s626_s10   ;;  %s461_s9 = sphi %s500_s9, %s625_s9  }
   0x6   : > { %s28_s17 = sadd.s32 1, %s477_s13  ;;  %s100_s18 = sadd.s32 1, %s469_s11 }
   0x7   : > { %p29_p0 = scmp.ge.s32.totalorder %s28_s17, 2  ;;  %p110_p1 = scmp.ne.s32.totalorder %s469_s11, %s465_s10 }
   0x8   : > { %p111_p2 = scmp.eq.s32.totalorder %s296_s15, 1  ;;  %p116_p3 = scmp.ne.s32.totalorder %s465_s10, %s461_s9 }
   0x9   : > { %s631_s17 = smov (%p29_p0, %s28_s17), 0  ;;  %p117_p5 = scmp.eq.s32.totalorder %s297_s16, 1 }
   0xa   : > { %p540_p4 = por %p111_p2, %p110_p1  ;;  %s93_s20 = ssub.s32 %s477_s13, %s631_s17 }
   0xb   : > { %p298_p6 = scmp.ge.s32.totalorder %s481_s14, 1  ;;  %p98_p7 = scmp.eq.s32.totalorder %s93_s20, 0 }
   0xc   : > { %p547_p8 = por %p117_p5, %p116_p3  ;;  %p124_p9 = scmp.lt.s32.totalorder %s481_s14, 3 }
   0xd   : > { %s553_s22 = scalar_select %p98_p7, %s469_s11, %s100_s18  }
   0xe   : > { %p555_p10 = pnand %p298_p6, %p124_p9  ;;  %p559_p11 = scmp.eq.s32.totalorder %s296_s15, 0 }
   0xf   : > { %s483_s25 = smov [#allocation2]  }
  0x10   : > { %p315_p12 = pneg %p555_p10  ;;  %s140_s26 = sshll.u32 %s483_s25, 4  ;;  %s141_s26 = int_to_ptr.vmem [resolvable:$true] %s140_s26 }
  0x11   : > { %s386_s27 = scalar_lea.vmem %s141_s26, 128  ;;  %p394_p5 = scmp.lt.s32.totalorder %s141_s26, %s141_s26 }
  0x12   : > { %p316_p13 = pnand %p559_p11, %p315_p12  ;;  %p387_p1 = scmp.ne.s32.totalorder %s141_s26, %s386_s27 }
  0x13   : > { %p395_p6 = scmp.lt.s32.totalorder %s386_s27, %s386_s27 }
  0x14   : > { %p377_p0 = pneg %p316_p13 }
  0x15   : > { %p396_p7 = por %p395_p6, %p394_p5 }
  0x16   : > { %p389_p2 = pnand %p387_p1, %p377_p0 }
  0x18   : > { %p390_p3 = pneg %p389_p2 }
  0x1a   : > { %p397_p9 = pnand %p396_p7, %p390_p3 }
  0x1c   : > { %400 = shalt.err (!%p397_p9)
}
  0x1d   : > { %318 = dma.hbm_to_vmem [thread:$0]  (!%p316_p13), %s618_s0, 128, %s141_s26, [#allocation3]  }
  0x1e   : > { %159 = sbr.rel (%p555_p10) target bundleno = 61 (0x3d), region = 28 }
  0x23   : > { %452 = dma.done.wait (%p559_p11), [#allocation3], 128  }
  0x24   : > { %454 = vsyncadd (%p559_p11), [#allocation3], 4294967168  ;;  %s176_s30 = sand.u32 1, %s465_s10   ;;  %s306_s6 = sshll.u32 %s473_s12, 7  ;;  %v182_v0 = vld [vmem:[#allocation2] sm:$0xff]  ;;  %vm191_vm0 = vcmask 261120  }
  0x25   : > { %s303_s3 = sshll.u32 %s176_s30, 3  ;;  %v304_v1 = vld [vmem:[%s619_s1] ss:$0 sm:$0xff]  ;;  %s207_s18 = scalar_lea.hbm %s620_s2, %s306_s6 }
  0x26   : > { %s178_s4 = scalar_lea.vmem [#allocation5], %s303_s3  ;;  %v190_v2 = vadd.f32 %v304_v1, %v182_v0  ;;  %s194_s20 = scalar_lea.sflag [#allocation4], %s176_s30 }
  0x27   : > { %s209_s5 = sshll.u32 %s178_s4, 4  ;;  %s484_s12 = smov [#allocation5]   ;;  %s210_s5 = int_to_ptr.vmem [resolvable:$true] %s209_s5 }
  0x28   : > { %192 = vst.msk [vmem:[%s178_s4] sm:$0xff] %vm191_vm0, %v190_v2  ;;  %s401_s23 = scalar_lea.vmem %s210_s5, 128  ;;  %s405_s24 = sshll.u32 %s484_s12, 4  ;;  %s406_s24 = int_to_ptr.vmem [resolvable:$false] %s405_s24 }
  0x29   : > { %p402_p10 = scmp.ne.s32.totalorder %s210_s5, %s401_s23  ;;  %s407_s25 = scalar_lea.vmem %s406_s24, 256 }
  0x2a   : > { %p408_p13 = scmp.lt.s32.totalorder %s210_s5, %s406_s24  ;;  %p409_p0 = scmp.lt.s32.totalorder %s407_s25, %s401_s23 }
  0x2b   : > { %p403_p11 = pnand %p402_p10, %p540_p4 }
  0x2c   : > { %p410_p1 = por %p409_p0, %p408_p13 }
  0x2d   : > { %p404_p12 = pneg %p403_p11 }
  0x2f   : > { %p411_p2 = pnand %p410_p1, %p404_p12 }
  0x31   : > { %414 = shalt.err (!%p411_p2)
}
  0x32   : > { %s415_s26 = scalar_lea.hbm %s207_s18, 128  ;;  %s419_s29 = scalar_lea.hbm %s620_s2, 256 }
  0x33   : > { %p416_p3 = scmp.ne.s32.totalorder %s207_s18, %s415_s26  ;;  %p420_p7 = scmp.lt.s32.totalorder %s207_s18, %s620_s2 }
  0x34   : > { %p421_p9 = scmp.lt.s32.totalorder %s419_s29, %s415_s26 }
  0x35   : > { %p417_p5 = pnand %p416_p3, %p540_p4 }
  0x36   : > { %p422_p10 = por %p421_p9, %p420_p7 }
  0x37   : > { %p418_p6 = pneg %p417_p5 }
  0x39   : > { %p423_p11 = pnand %p422_p10, %p418_p6 }
  0x3b   : > { %426 = shalt.err (!%p423_p11)
}
  0x3c   : > { %313 = dma.vmem_to_hbm [thread:$0]  (%p540_p4), %s210_s5, 128, %s207_s18, %s194_s20  }
  0x3d PF: > { %p325_p12 = scmp.ge.s32.totalorder %s481_s14, 2  ;;  %s221_s4 = sand.u32 1, %s461_s9  }
  0x3e   : > { %s222_s6 = scalar_lea.sflag [#allocation4], %s221_s4 }
  0x3f   : > { %p320_p13 = pnand %p325_p12, %p547_p8 }
  0x41   : > { %p321_p0 = pneg %p320_p13 }
  0x43   : > { %456 = dma.done.wait (%p321_p0), %s222_s6, 128  }
  0x44   : > { %458 = vsyncadd (%p321_p0), %s222_s6, 4294967168  ;;  %s16_s14 = sadd.s32 1, %s481_s14   ;;  %s625_s9 = smov %s465_s10 }
  0x45   : > { %p13_p1 = scmp.ge.s32.totalorder %s16_s14, 4   ;;  %s626_s10 = smov %s469_s11 }
  0x46   : > { %s627_s11 = smov %s553_s22  ;;  %s628_s12 = smov %s477_s13 }
  0x47   : > { %s629_s13 = smov %s631_s17  ;;  %15 = sbr.rel (!%p13_p1) target bundleno = 5 (0x5), region = 69 }
  0x4c   :  { %227 = vsyncpa [#allocation3], 1 }
  0x4d   :  { %229 = vsyncpa [#allocation3 + $0x1], 1 }
  0x4e   :  { %230 = vsyncpa [#allocation4], 1 }
  0x4f   :  { %232 = vsyncpa [#allocation4 + $0x1], 1 }

</bundles_post_ra>
